<compile_context>
chip_gen: v7x
topology: tpu7x:2x2x1
jax: 0.10.0
libtpu: 0.0.40
codegen_flags: <defaults>
</compile_context>

<pallas_src>
import functools

import jax
import jax.numpy as jnp
from jax.experimental import pallas as pl
from jax.experimental.pallas import tpu as pltpu

LN_EPS = 1e-5  # nn.LayerNorm default


def _round_up(x, m):
    return ((x + m - 1) // m) * m


def _vmem_capacity_bytes():
    try:
        return int(pltpu.get_tpu_info().vmem_capacity_bytes)
    except Exception:
        return 64 << 20  # conservative: v7x has 64 MiB per TensorCore


def _choose_tb(batch, block_b):
    """Batch tile: sublane-aligned, MXU-friendly, >= 2 grid steps when possible."""
    align = 8
    b_aligned = _round_up(batch, align)
    tb = min(_round_up(block_b, align), b_aligned)
    # Prefer at least 2 grid steps so v7x's two TensorCores both get work.
    if b_aligned // tb < 2 and b_aligned >= 2 * align:
        tb = _round_up(-(-b_aligned // 2), align)  # ceil(b/2), 8-aligned
    # MXU (256x256 on v6e/v7x) / bf16 sublane-packing friendly rounding.
    if tb >= 256:
        tb = _round_up(tb, 256)
    elif tb >= 16:
        tb = _round_up(tb, 16)
    return tb


def resnet_block_kernel(x_ref, w1_ref, w2_ref, p_ref, o_ref, *, d_real):
    # Parameter slab rows: [b1, gamma, beta, b2], each (1, Dp) f32.
    b1 = p_ref[0:1, :]
    gamma = p_ref[1:2, :]
    beta = p_ref[2:3, :]
    b2 = p_ref[3:4, :]

    # fc1: bf16 MXU matmul with f32 accumulation. Padded columns of w1 and
    # padded lanes of b1 are zero, so padded lanes of h are exactly zero and
    # no masking is needed anywhere below.
    h = jnp.dot(x_ref[...].astype(jnp.bfloat16), w1_ref[...],
                preferred_element_type=jnp.float32) + b1

    # LayerNorm over the real feature dim; single-pass stats (E[h^2] - mean^2).
    inv_d = 1.0 / float(d_real)
    mean = jnp.sum(h, axis=-1, keepdims=True) * inv_d
    var = jnp.maximum(jnp.sum(h * h, axis=-1, keepdims=True) * inv_d - mean * mean,
                      0.0)
    h = (h - mean) * jax.lax.rsqrt(var + LN_EPS)
    h = h * gamma + beta  # padded lanes: gamma = beta = 0 -> back to exactly 0

    # ReLU (dropout p=0.0 / eval mode -> identity).
    h = jnp.maximum(h, 0.0)

    # fc2: bf16 MXU matmul with f32 accumulation.
    out = jnp.dot(h.astype(jnp.bfloat16), w2_ref[...],
                  preferred_element_type=jnp.float32) + b2

    # Residual: (re)load the x tile *here* so its f32 copy has a short live range.
    o_ref[...] = (out + x_ref[...].astype(jnp.float32)).astype(o_ref.dtype)


def prepare_resnet_block_params(w1, b1, gamma, beta, w2, b2):
    """Pad params to a lane-dense feature dim and cast weights to bf16 (once).

    w1/w2 are [D, D], already transposed so that y = x @ w + b.
    """
    D = w1.shape[0]
    Dp = _round_up(max(D, 128), 128)
    pad = Dp - D
    w1p = jnp.pad(w1, ((0, pad), (0, pad))).astype(jnp.bfloat16)
    w2p = jnp.pad(w2, ((0, pad), (0, pad))).astype(jnp.bfloat16)
    slab = jnp.concatenate(
        [b1.reshape(1, D), gamma.reshape(1, D), beta.reshape(1, D),
         b2.reshape(1, D)], axis=0)
    slab = jnp.pad(slab, ((0, 0), (0, pad))).astype(jnp.float32)
    return {"w1": w1p, "w2": w2p, "slab": slab, "d_real": D, "d_pad": Dp}


def resnet_block(x, params, *, block_b=None):
    """x: [B, D] (f32 or bf16 -- bf16 I/O halves HBM traffic in the mem-bound
    regime); params: output of prepare_resnet_block_params."""
    B, D = x.shape
    assert D == params["d_real"]
    Dp = params["d_pad"]
    w1p, w2p, slab = params["w1"], params["w2"], params["slab"]

    # Larger batch tiles when the feature dim is small (amortize ~0.35us/step).
    if block_b is None:
        block_b = 1024 if Dp <= 512 else 256
    TB = _choose_tb(B, block_b)
    Bp = _round_up(B, TB)

    # Skip the x pad entirely when already aligned (no extra HBM copy).
    aligned = (Bp == B and Dp == D)
    xp = x if aligned else jnp.pad(x, ((0, Bp - B), (0, Dp - D)))

    # VMEM budget, capped by physical capacity (v7x: 64 MiB; v5e/v6e: 128 MiB).
    x_bytes = jnp.dtype(x.dtype).itemsize
    need = (2 * 2 * TB * Dp * x_bytes   # x/out tiles, double-buffered
            + 2 * Dp * Dp * 2           # resident bf16 weights (single-buffered)
            + 2 * Dp * Dp * 2           # slack if the compiler double-buffers them
            + 8 * Dp * 4                # param slab (sublane-padded)
            + 6 * TB * Dp * 4           # f32 temporaries (h, out, stats)
            + (4 << 20))                # headroom
    cap = _vmem_capacity_bytes()
    vmem_limit = int(min(max(need, 32 << 20), int(cap * 0.85)))

    grid = (Bp // TB,)
    flops = 2 * 2 * Bp * Dp * Dp  # two Bp x Dp x Dp matmuls
    bytes_accessed = (xp.size * x_bytes + Bp * Dp * x_bytes
                      + w1p.size * 2 + w2p.size * 2 + slab.size * 4)

    kernel = functools.partial(resnet_block_kernel, d_real=D)

    def _call(single_buffer_weights):
        if single_buffer_weights:
            # Constant index_map -> DMA'd once; one buffer is enough.
            def w_spec():
                return pl.BlockSpec((Dp, Dp), lambda i: (0, 0),
                                    pipeline_mode=pl.Buffered(1))
            p_spec = pl.BlockSpec((4, Dp), lambda i: (0, 0),
                                  pipeline_mode=pl.Buffered(1))
        else:
            def w_spec():
                return pl.BlockSpec((Dp, Dp), lambda i: (0, 0))
            p_spec = pl.BlockSpec((4, Dp), lambda i: (0, 0))
        return pl.pallas_call(
            kernel,
            out_shape=jax.ShapeDtypeStruct((Bp, Dp), x.dtype),
            grid=grid,
            in_specs=[
                pl.BlockSpec((TB, Dp), lambda i: (i, 0)),   # x: tiled over batch
                w_spec(),                                   # w1: resident in VMEM
                w_spec(),                                   # w2: resident in VMEM
                p_spec,                                     # [b1; gamma; beta; b2]
            ],
            out_specs=pl.BlockSpec((TB, Dp), lambda i: (i, 0)),
            compiler_params=pltpu.CompilerParams(
                dimension_semantics=("parallel",),
                vmem_limit_bytes=vmem_limit),
            cost_estimate=pl.CostEstimate(
                flops=flops, transcendentals=0, bytes_accessed=bytes_accessed),
        )(xp, w1p, w2p, slab)

    try:
        out_p = _call(single_buffer_weights=True)
    except Exception:
        # Fallback if this JAX build rejects pipeline_mode=pl.Buffered(1).
        out_p = _call(single_buffer_weights=False)

    return out_p if aligned else out_p[:B, :D]


def reference(x, w1, b1, gamma, beta, w2, b2):
    """Pure-JAX reference with the same bf16-matmul / f32-accumulate math."""
    h = jnp.dot(x.astype(jnp.bfloat16), w1.astype(jnp.bfloat16),
                preferred_element_type=jnp.float32) + b1
    mean = h.mean(-1, keepdims=True)
    var = ((h - mean) ** 2).mean(-1, keepdims=True)
    h = (h - mean) * jax.lax.rsqrt(var + LN_EPS)
    h = h * gamma + beta
    h = jnp.maximum(h, 0.0)
    out = jnp.dot(h.astype(jnp.bfloat16), w2.astype(jnp.bfloat16),
                  preferred_element_type=jnp.float32) + b2
    return out + x


if __name__ == "__main__":
    B, D = 16, 32  # small shapes implied by the module (Linear(dim, dim))
    key = jax.random.PRNGKey(0)
    kx, k1, k2, kb1, kb2 = jax.random.split(key, 5)

    x = jax.random.normal(kx, (B, D), dtype=jnp.float32)

    # PyTorch Linear weight is [out, in]; stored here pre-transposed [in, out].
    bound = 1.0 / (D ** 0.5)
    w1 = jax.random.uniform(k1, (D, D), minval=-bound, maxval=bound, dtype=jnp.float32)
    w2 = jax.random.uniform(k2, (D, D), minval=-bound, maxval=bound, dtype=jnp.float32)
    b1 = jax.random.uniform(kb1, (1, D), minval=-bound, maxval=bound, dtype=jnp.float32)
    b2 = jax.random.uniform(kb2, (1, D), minval=-bound, maxval=bound, dtype=jnp.float32)
    gamma = jnp.ones((1, D), dtype=jnp.float32)   # LayerNorm init
    beta = jnp.zeros((1, D), dtype=jnp.float32)

    prep = prepare_resnet_block_params(w1, b1, gamma, beta, w2, b2)  # once, reused
    out = resnet_block(x, prep)            # TB=8 -> 2-step grid at this demo size
    out = jax.block_until_ready(out)

    ref = reference(x, w1, b1, gamma, beta, w2, b2)
    assert out.shape == (B, D)
    assert jnp.allclose(out, ref, atol=2e-3, rtol=2e-3), "mismatch vs JAX reference"
    print("KERNEL_OK")
</pallas_src>

<mosaic_0001>
module attributes {stable_mosaic.version = 11 : i64} {
  func.func @resnet_block_kernel(%arg0: i32, %arg1: memref<8x128xf32, #tpu.memory_space<vmem>>, %arg2: memref<128x128xbf16, #tpu.memory_space<vmem>>, %arg3: memref<128x128xbf16, #tpu.memory_space<vmem>>, %arg4: memref<4x128xf32, #tpu.memory_space<vmem>>, %arg5: memref<8x128xf32, #tpu.memory_space<vmem>>) attributes {dimension_semantics = [#tpu.dimension_semantics<parallel>], iteration_bounds = array<i64: 2>, scalar_prefetch = 0 : i64, scratch_operands = 0 : i64, tpu.core_type = #tpu.core_type<tc>, window_params = [{transform_indices = @transform_0, window_bounds = array<i64: 8, 128>}, {pipeline_mode = #tpu.pipeline_mode<synchronous>, transform_indices = @transform_1, window_bounds = array<i64: 128, 128>}, {pipeline_mode = #tpu.pipeline_mode<synchronous>, transform_indices = @transform_2, window_bounds = array<i64: 128, 128>}, {pipeline_mode = #tpu.pipeline_mode<synchronous>, transform_indices = @transform_3, window_bounds = array<i64: 4, 128>}, {transform_indices = @transform_4, window_bounds = array<i64: 8, 128>}]} {
    %c0 = arith.constant 0 : index
    %c0_0 = arith.constant 0 : index
    %0 = vector.load %arg4[%c0, %c0_0] : memref<4x128xf32, #tpu.memory_space<vmem>>, vector<1x128xf32>
    %c1 = arith.constant 1 : index
    %c0_1 = arith.constant 0 : index
    %1 = vector.load %arg4[%c1, %c0_1] : memref<4x128xf32, #tpu.memory_space<vmem>>, vector<1x128xf32>
    %c2 = arith.constant 2 : index
    %c0_2 = arith.constant 0 : index
    %2 = vector.load %arg4[%c2, %c0_2] : memref<4x128xf32, #tpu.memory_space<vmem>>, vector<1x128xf32>
    %c3 = arith.constant 3 : index
    %c0_3 = arith.constant 0 : index
    %3 = vector.load %arg4[%c3, %c0_3] : memref<4x128xf32, #tpu.memory_space<vmem>>, vector<1x128xf32>
    %c0_4 = arith.constant 0 : index
    %c0_5 = arith.constant 0 : index
    %4 = vector.load %arg1[%c0_4, %c0_5] : memref<8x128xf32, #tpu.memory_space<vmem>>, vector<8x128xf32>
    %5 = arith.truncf %4 : vector<8x128xf32> to vector<8x128xbf16>
    %c0_6 = arith.constant 0 : index
    %c0_7 = arith.constant 0 : index
    %6 = vector.load %arg2[%c0_6, %c0_7] : memref<128x128xbf16, #tpu.memory_space<vmem>>, vector<128x128xbf16>
    %cst = arith.constant dense<0.000000e+00> : vector<8x128xf32>
    %7 = tpu.matmul %5, %6, %cst {dimension_numbers = #tpu.dot_dimension_numbers<[1], [0], [0], [1], [0, 0, 1, 1], [], []>} : vector<8x128xbf16>, vector<128x128xbf16>, vector<8x128xf32> -> vector<8x128xf32>
    %8 = vector.broadcast %0 : vector<1x128xf32> to vector<8x128xf32>
    %9 = arith.addf %7, %8 : vector<8x128xf32>
    %cst_8 = arith.constant dense<0.000000e+00> : vector<8xf32>
    %10 = vector.multi_reduction <add>, %9, %cst_8 [1] : vector<8x128xf32> to vector<8xf32>
    %11 = vector.shape_cast %10 : vector<8xf32> to vector<8x1xf32>
    %cst_9 = arith.constant 3.125000e-02 : f32
    %12 = vector.broadcast %cst_9 : f32 to vector<8x1xf32>
    %13 = arith.mulf %11, %12 : vector<8x1xf32>
    %14 = arith.mulf %9, %9 : vector<8x128xf32>
    %cst_10 = arith.constant dense<0.000000e+00> : vector<8xf32>
    %15 = vector.multi_reduction <add>, %14, %cst_10 [1] : vector<8x128xf32> to vector<8xf32>
    %16 = vector.shape_cast %15 : vector<8xf32> to vector<8x1xf32>
    %cst_11 = arith.constant 3.125000e-02 : f32
    %17 = vector.broadcast %cst_11 : f32 to vector<8x1xf32>
    %18 = arith.mulf %16, %17 : vector<8x1xf32>
    %19 = arith.mulf %13, %13 : vector<8x1xf32>
    %20 = arith.subf %18, %19 : vector<8x1xf32>
    %cst_12 = arith.constant 0.000000e+00 : f32
    %21 = vector.broadcast %cst_12 : f32 to vector<8x1xf32>
    %22 = arith.maximumf %20, %21 : vector<8x1xf32>
    %23 = vector.broadcast %13 : vector<8x1xf32> to vector<8x128xf32>
    %24 = arith.subf %9, %23 : vector<8x128xf32>
    %cst_13 = arith.constant 9.99999974E-6 : f32
    %25 = vector.broadcast %cst_13 : f32 to vector<8x1xf32>
    %26 = arith.addf %22, %25 : vector<8x1xf32>
    %27 = math.rsqrt %26 : vector<8x1xf32>
    %28 = vector.broadcast %27 : vector<8x1xf32> to vector<8x128xf32>
    %29 = arith.mulf %24, %28 : vector<8x128xf32>
    %30 = vector.broadcast %1 : vector<1x128xf32> to vector<8x128xf32>
    %31 = arith.mulf %29, %30 : vector<8x128xf32>
    %32 = vector.broadcast %2 : vector<1x128xf32> to vector<8x128xf32>
    %33 = arith.addf %31, %32 : vector<8x128xf32>
    %cst_14 = arith.constant 0.000000e+00 : f32
    %34 = vector.broadcast %cst_14 : f32 to vector<8x128xf32>
    %35 = arith.maximumf %33, %34 : vector<8x128xf32>
    %36 = arith.truncf %35 : vector<8x128xf32> to vector<8x128xbf16>
    %c0_15 = arith.constant 0 : index
    %c0_16 = arith.constant 0 : index
    %37 = vector.load %arg3[%c0_15, %c0_16] : memref<128x128xbf16, #tpu.memory_space<vmem>>, vector<128x128xbf16>
    %cst_17 = arith.constant dense<0.000000e+00> : vector<8x128xf32>
    %38 = tpu.matmul %36, %37, %cst_17 {dimension_numbers = #tpu.dot_dimension_numbers<[1], [0], [0], [1], [0, 0, 1, 1], [], []>} : vector<8x128xbf16>, vector<128x128xbf16>, vector<8x128xf32> -> vector<8x128xf32>
    %39 = vector.broadcast %3 : vector<1x128xf32> to vector<8x128xf32>
    %40 = arith.addf %38, %39 : vector<8x128xf32>
    %c0_18 = arith.constant 0 : index
    %c0_19 = arith.constant 0 : index
    %41 = vector.load %arg1[%c0_18, %c0_19] : memref<8x128xf32, #tpu.memory_space<vmem>>, vector<8x128xf32>
    %42 = arith.addf %40, %41 : vector<8x128xf32>
    %c0_20 = arith.constant 0 : index
    %c0_21 = arith.constant 0 : index
    %43 = vector.load %arg5[%c0_20, %c0_21] : memref<8x128xf32, #tpu.memory_space<vmem>>, vector<8x128xf32>
    tpu.vector_store %arg5[%c0_20, %c0_21], %42 {strides = array<i32>} : memref<8x128xf32, #tpu.memory_space<vmem>>, vector<8x128xf32>,
    return
  }
  func.func @transform_0(%arg0: i32) -> (i32, i32) {
    %c0_i32 = arith.constant 0 : i32
    %c0_i32_0 = arith.constant 0 : i32
    return %arg0, %c0_i32 : i32, i32
  }
  func.func @transform_1(%arg0: i32) -> (i32, i32) {
    %c0_i32 = arith.constant 0 : i32
    %c0_i32_0 = arith.constant 0 : i32
    %c0_i32_1 = arith.constant 0 : i32
    return %c0_i32, %c0_i32_0 : i32, i32
  }
  func.func @transform_2(%arg0: i32) -> (i32, i32) {
    %c0_i32 = arith.constant 0 : i32
    %c0_i32_0 = arith.constant 0 : i32
    %c0_i32_1 = arith.constant 0 : i32
    return %c0_i32, %c0_i32_0 : i32, i32
  }
  func.func @transform_3(%arg0: i32) -> (i32, i32) {
    %c0_i32 = arith.constant 0 : i32
    %c0_i32_0 = arith.constant 0 : i32
    %c0_i32_1 = arith.constant 0 : i32
    return %c0_i32, %c0_i32_0 : i32, i32
  }
  func.func @transform_4(%arg0: i32) -> (i32, i32) {
    %c0_i32 = arith.constant 0 : i32
    %c0_i32_0 = arith.constant 0 : i32
    return %arg0, %c0_i32 : i32, i32
  }
}

module attributes {stable_mosaic.version = 11 : i64} {
  func.func @resnet_block_kernel(%arg0: i32, %arg1: memref<8x128xf32, #tpu.memory_space<vmem>>, %arg2: memref<128x128xbf16, #tpu.memory_space<vmem>>, %arg3: memref<128x128xbf16, #tpu.memory_space<vmem>>, %arg4: memref<4x128xf32, #tpu.memory_space<vmem>>, %arg5: memref<8x128xf32, #tpu.memory_space<vmem>>) attributes {dimension_semantics = [#tpu.dimension_semantics<parallel>], iteration_bounds = array<i64: 2>, scalar_prefetch = 0 : i64, scratch_operands = 0 : i64, tpu.core_type = #tpu.core_type<tc>, window_params = [{transform_indices = @transform_0, window_bounds = array<i64: 8, 128>}, {pipeline_mode = #tpu.pipeline_mode<synchronous>, transform_indices = @transform_1, window_bounds = array<i64: 128, 128>}, {pipeline_mode = #tpu.pipeline_mode<synchronous>, transform_indices = @transform_2, window_bounds = array<i64: 128, 128>}, {pipeline_mode = #tpu.pipeline_mode<synchronous>, transform_indices = @transform_3, window_bounds = array<i64: 4, 128>}, {transform_indices = @transform_4, window_bounds = array<i64: 8, 128>}]} {
    %c0 = arith.constant 0 : index
    %c0_0 = arith.constant 0 : index
    %0 = vector.load %arg4[%c0, %c0_0] : memref<4x128xf32, #tpu.memory_space<vmem>>, vector<1x128xf32>
    %c1 = arith.constant 1 : index
    %c0_1 = arith.constant 0 : index
    %1 = vector.load %arg4[%c1, %c0_1] : memref<4x128xf32, #tpu.memory_space<vmem>>, vector<1x128xf32>
    %c2 = arith.constant 2 : index
    %c0_2 = arith.constant 0 : index
    %2 = vector.load %arg4[%c2, %c0_2] : memref<4x128xf32, #tpu.memory_space<vmem>>, vector<1x128xf32>
    %c3 = arith.constant 3 : index
    %c0_3 = arith.constant 0 : index
    %3 = vector.load %arg4[%c3, %c0_3] : memref<4x128xf32, #tpu.memory_space<vmem>>, vector<1x128xf32>
    %c0_4 = arith.constant 0 : index
    %c0_5 = arith.constant 0 : index
    %4 = vector.load %arg1[%c0_4, %c0_5] : memref<8x128xf32, #tpu.memory_space<vmem>>, vector<8x128xf32>
    %5 = arith.truncf %4 : vector<8x128xf32> to vector<8x128xbf16>
    %c0_6 = arith.constant 0 : index
    %c0_7 = arith.constant 0 : index
    %6 = vector.load %arg2[%c0_6, %c0_7] : memref<128x128xbf16, #tpu.memory_space<vmem>>, vector<128x128xbf16>
    %cst = arith.constant dense<0.000000e+00> : vector<8x128xf32>
    %7 = tpu.matmul %5, %6, %cst {dimension_numbers = #tpu.dot_dimension_numbers<[1], [0], [0], [1], [0, 0, 1, 1], [], []>} : vector<8x128xbf16>, vector<128x128xbf16>, vector<8x128xf32> -> vector<8x128xf32>
    %8 = vector.broadcast %0 : vector<1x128xf32> to vector<8x128xf32>
    %9 = arith.addf %7, %8 : vector<8x128xf32>
    %cst_8 = arith.constant dense<0.000000e+00> : vector<8xf32>
    %10 = vector.multi_reduction <add>, %9, %cst_8 [1] : vector<8x128xf32> to vector<8xf32>
    %11 = vector.shape_cast %10 : vector<8xf32> to vector<8x1xf32>
    %cst_9 = arith.constant 3.125000e-02 : f32
    %12 = vector.broadcast %cst_9 : f32 to vector<8x1xf32>
    %13 = arith.mulf %11, %12 : vector<8x1xf32>
    %14 = arith.mulf %9, %9 : vector<8x128xf32>
    %cst_10 = arith.constant dense<0.000000e+00> : vector<8xf32>
    %15 = vector.multi_reduction <add>, %14, %cst_10 [1] : vector<8x128xf32> to vector<8xf32>
    %16 = vector.shape_cast %15 : vector<8xf32> to vector<8x1xf32>
    %cst_11 = arith.constant 3.125000e-02 : f32
    %17 = vector.broadcast %cst_11 : f32 to vector<8x1xf32>
    %18 = arith.mulf %16, %17 : vector<8x1xf32>
    %19 = arith.mulf %13, %13 : vector<8x1xf32>
    %20 = arith.subf %18, %19 : vector<8x1xf32>
    %cst_12 = arith.constant 0.000000e+00 : f32
    %21 = vector.broadcast %cst_12 : f32 to vector<8x1xf32>
    %22 = arith.maximumf %20, %21 : vector<8x1xf32>
    %23 = vector.broadcast %13 : vector<8x1xf32> to vector<8x128xf32>
    %24 = arith.subf %9, %23 : vector<8x128xf32>
    %cst_13 = arith.constant 9.99999974E-6 : f32
    %25 = vector.broadcast %cst_13 : f32 to vector<8x1xf32>
    %26 = arith.addf %22, %25 : vector<8x1xf32>
    %27 = math.rsqrt %26 : vector<8x1xf32>
    %28 = vector.broadcast %27 : vector<8x1xf32> to vector<8x128xf32>
    %29 = arith.mulf %24, %28 : vector<8x128xf32>
    %30 = vector.broadcast %1 : vector<1x128xf32> to vector<8x128xf32>
    %31 = arith.mulf %29, %30 : vector<8x128xf32>
    %32 = vector.broadcast %2 : vector<1x128xf32> to vector<8x128xf32>
    %33 = arith.addf %31, %32 : vector<8x128xf32>
    %cst_14 = arith.constant 0.000000e+00 : f32
    %34 = vector.broadcast %cst_14 : f32 to vector<8x128xf32>
    %35 = arith.maximumf %33, %34 : vector<8x128xf32>
    %36 = arith.truncf %35 : vector<8x128xf32> to vector<8x128xbf16>
    %c0_15 = arith.constant 0 : index
    %c0_16 = arith.constant 0 : index
    %37 = vector.load %arg3[%c0_15, %c0_16] : memref<128x128xbf16, #tpu.memory_space<vmem>>, vector<128x128xbf16>
    %cst_17 = arith.constant dense<0.000000e+00> : vector<8x128xf32>
    %38 = tpu.matmul %36, %37, %cst_17 {dimension_numbers = #tpu.dot_dimension_numbers<[1], [0], [0], [1], [0, 0, 1, 1], [], []>} : vector<8x128xbf16>, vector<128x128xbf16>, vector<8x128xf32> -> vector<8x128xf32>
    %39 = vector.broadcast %3 : vector<1x128xf32> to vector<8x128xf32>
    %40 = arith.addf %38, %39 : vector<8x128xf32>
    %c0_18 = arith.constant 0 : index
    %c0_19 = arith.constant 0 : index
    %41 = vector.load %arg1[%c0_18, %c0_19] : memref<8x128xf32, #tpu.memory_space<vmem>>, vector<8x128xf32>
    %42 = arith.addf %40, %41 : vector<8x128xf32>
    %c0_20 = arith.constant 0 : index
    %c0_21 = arith.constant 0 : index
    %43 = vector.load %arg5[%c0_20, %c0_21] : memref<8x128xf32, #tpu.memory_space<vmem>>, vector<8x128xf32>
    tpu.vector_store %arg5[%c0_20, %c0_21], %42 {strides = array<i32>} : memref<8x128xf32, #tpu.memory_space<vmem>>, vector<8x128xf32>,
    return
  }
  func.func @transform_0(%arg0: i32) -> (i32, i32) {
    %c0_i32 = arith.constant 0 : i32
    %c0_i32_0 = arith.constant 0 : i32
    return %arg0, %c0_i32 : i32, i32
  }
  func.func @transform_1(%arg0: i32) -> (i32, i32) {
    %c0_i32 = arith.constant 0 : i32
    %c0_i32_0 = arith.constant 0 : i32
    %c0_i32_1 = arith.constant 0 : i32
    return %c0_i32, %c0_i32_0 : i32, i32
  }
  func.func @transform_2(%arg0: i32) -> (i32, i32) {
    %c0_i32 = arith.constant 0 : i32
    %c0_i32_0 = arith.constant 0 : i32
    %c0_i32_1 = arith.constant 0 : i32
    return %c0_i32, %c0_i32_0 : i32, i32
  }
  func.func @transform_3(%arg0: i32) -> (i32, i32) {
    %c0_i32 = arith.constant 0 : i32
    %c0_i32_0 = arith.constant 0 : i32
    %c0_i32_1 = arith.constant 0 : i32
    return %c0_i32, %c0_i32_0 : i32, i32
  }
  func.func @transform_4(%arg0: i32) -> (i32, i32) {
    %c0_i32 = arith.constant 0 : i32
    %c0_i32_0 = arith.constant 0 : i32
    return %arg0, %c0_i32 : i32, i32
  }
}

</mosaic_0001>

<bundles_post_ra>
// kernel: tpu_custom_call.1
= control target key start
LH: loop header
LB: loop body
LE: loop exit
PB: predicated region body
PF: predicated region fallthrough
CT: control target
= control target key end

     0   :  { %9 = vsyncpa [#allocation3], 0  ;;  %s1223_s0 = inlined_call_operand.hbm [shape: f32[16,128], index: 0, kind: input, shape index: {}]   ;;  %s1224_s1 = inlined_call_operand.hbm [shape: bf16[128,128], index: 1, kind: input, shape index: {}]   ;;  %s1225_s2 = inlined_call_operand.hbm [shape: bf16[128,128], index: 2, kind: input, shape index: {}]   ;;  %s1226_s3 = inlined_call_operand.vmem [shape: f32[4,128], index: 3, kind: input, shape index: {}]   ;;  %s1227_s4 = inlined_call_operand.hbm [shape: f32[16,128], index: 4, kind: output, shape index: {}]  }
   0x1   :  { %11 = vsyncpa [#allocation3 + $0x1], 0 }
   0x2   :  { %12 = vsyncpa [#allocation6], 0 }
   0x3   :  { %13 = vsyncpa [#allocation4], 0 }
   0x4   :  { %15 = vsyncpa [#allocation4 + $0x1], 0  ;;  %s970_s15 = smov 0   ;;  %s972_s16 = smov 0  }
   0x5   :  { %s974_s17 = smov 0   ;;  %s976_s18 = smov 0  }
   0x6 LB: > { %s991_s19 = sadd.s32 4294967295, %s935_s18   ;;  %s596_s20 = sadd.s32 4294967294, %s935_s18   ;;  %s935_s18 = sphi %s976_s18, %s1247_s18   ;;  %s931_s17 = sphi %s974_s17, %s1246_s17   ;;  %s927_s16 = sphi %s972_s16, %s1245_s16   ;;  %s923_s15 = sphi %s970_s15, %s1244_s15  }
   0x7   : > { %p41_p0 = scmp.ne.s32.totalorder %s927_s16, %s923_s15  ;;  %p1228_p1 = scmp.eq.s32.totalorder %s991_s19, 0 }
   0x8   : > { %p134_p3 = scmp.eq.s32.totalorder %s596_s20, 1  ;;  %p597_p5 = scmp.ge.s32.totalorder %s935_s18, 1 }
   0x9   : > { %p1000_p4 = por %p1228_p1, %p41_p0  ;;  %p141_p7 = scmp.lt.s32.totalorder %s935_s18, 3 }
   0xa   : > { %p1005_p6 = por %p134_p3, %p41_p0  ;;  %s937_s24 = smov [#allocation5]  }
   0xb   : > { %s1231_s21 = scalar_select %p1000_p4, 1, 0 }
   0xc   : > { %s1232_s22 = scalar_select %p1005_p6, 1, 0 }
   0xd   : > { %p1010_p8 = pnand %p597_p5, %p141_p7  ;;  %s153_s25 = sshll.u32 %s937_s24, 4  ;;  %s1014_s25 = int_to_ptr.vmem [resolvable:$true] %s153_s25 }
   0xe   : > { %s938_s27 = smov [#allocation7]   ;;  %s779_s5 = scalar_lea.hbm %s1224_s1, 1024 }
   0xf   : > { %p702_p9 = pneg %p1010_p8  ;;  %s166_s28 = sshll.u32 %s938_s27, 4  ;;  %s1025_s28 = int_to_ptr.vmem [resolvable:$true] %s166_s28 }
  0x10   : > { %p780_p12 = scmp.ne.s32.totalorder %s1224_s1, %s779_s5  ;;  %p786_p5 = scmp.lt.u32.totalorder %s779_s5, %s1224_s1 }
  0x11   : > { %p1021_p11 = pnand %p702_p9, %p1228_p1 }
  0x13   : > { %p781_p13 = pneg %p1021_p11 }
  0x15   : > { %p782_p0 = pnand %p781_p13, %p780_p12 }
  0x17   : > { %p783_p3 = pneg %p782_p0 }
  0x19   : > { %p788_p7 = pnand %p786_p5, %p783_p3 }
  0x1b   : > { %791 = shalt.err (!%p788_p7)
}
  0x1c   : > { %s792_s10 = scalar_lea.vmem %s1014_s25, 1024  ;;  %p800_p2 = scmp.lt.s32.totalorder %s1014_s25, %s1014_s25 }
  0x1d   : > { %p793_p9 = scmp.ne.s32.totalorder %s1014_s25, %s792_s10  ;;  %p801_p12 = scmp.lt.s32.totalorder %s792_s10, %s792_s10 }
  0x1f   : > { %p795_p10 = pnand %p793_p9, %p781_p13  ;;  %p802_p0 = por %p801_p12, %p800_p2 }
  0x21   : > { %p796_p1 = pneg %p795_p10 }
  0x23   : > { %p803_p6 = pnand %p802_p0, %p796_p1 }
  0x25   : > { %806 = shalt.err (!%p803_p6)
}
  0x26   : > { %s939_s11 = smov 64   ;;  %s940_s12 = smov 4  }
  0x27   : > { %705 = dma.hbm_to_vmem [thread:$0]  (!%p1021_p11), %s1224_s1, 1024, %s1014_s25, [#allocation6], %s939_s11, %s939_s11, %s940_s12  }
  0x28   : > { %s807_s27 = scalar_lea.hbm %s1225_s2, 1024 }
  0x29   : > { %p808_p2 = scmp.ne.s32.totalorder %s1225_s2, %s807_s27  ;;  %p814_p10 = scmp.lt.u32.totalorder %s807_s27, %s1225_s2 }
  0x2b   : > { %p810_p1 = pnand %p808_p2, %p781_p13 }
  0x2d   : > { %p811_p6 = pneg %p810_p1 }
  0x2f   : > { %p816_p3 = pnand %p814_p10, %p811_p6 }
  0x31   : > { %819 = shalt.err (!%p816_p3)
}
  0x32   : > { %s820_s25 = scalar_lea.vmem %s1025_s28, 1024  ;;  %p828_p12 = scmp.lt.s32.totalorder %s1025_s28, %s1025_s28 }
  0x33   : > { %p821_p5 = scmp.ne.s32.totalorder %s1025_s28, %s820_s25  ;;  %p829_p0 = scmp.lt.s32.totalorder %s820_s25, %s820_s25 }
  0x35   : > { %p823_p7 = pnand %p821_p5, %p781_p13  ;;  %p830_p2 = por %p829_p0, %p828_p12 }
  0x37   : > { %p824_p9 = pneg %p823_p7 }
  0x39   : > { %p831_p1 = pnand %p830_p2, %p824_p9 }
  0x3b   : > { %834 = shalt.err (!%p831_p1)
}
  0x3c   : > { %708 = dma.hbm_to_vmem [thread:$0]  (!%p1021_p11), %s1225_s2, 1024, %s1025_s28, [#allocation6], %s939_s11, %s939_s11, %s940_s12  }
  0x3d   : > { %s1080_s9 = sadd.s32 1, %s935_s18   ;;  %s28_s26 = sadd.s32 1, %s931_s17 }
  0x3e   : > { %s25_s10 = ssub.s32 %s935_s18, %s1080_s9  ;;  %p35_p13 = scmp.ne.s32.totalorder %s931_s17, %s927_s16 }
  0x3f   : > { %p26_p6 = scmp.eq.s32.totalorder %s25_s10, 0  ;;  %p36_p10 = scmp.eq.s32.totalorder %s935_s18, 0 }
  0x40   : > { %p1235_p3 = scmp.eq.s32.totalorder %s991_s19, 1  ;;  %p719_p7 = scmp.lt.s32.totalorder %s935_s18, 2 }
  0x41   : > { %s1096_s14 = scalar_select %p26_p6, %s931_s17, %s28_s26  }
  0x42   : > { %p1090_p5 = por %p1235_p3, %p35_p13  ;;  %p37_p9 = por %p36_p10, %p35_p13 }
  0x43   : > { %s183_s20 = sand.u32 1, %s931_s17   ;;  %s602_s28 = sshll.u32 %s935_s18, 7 }
  0x44   : > { %s1236_s13 = scalar_select %p1090_p5, 1, 0 }
  0x45   : > { %s601_s24 = sshll.u32 %s183_s20, 3  ;;  %s1103_s27 = scalar_lea.hbm %s1223_s0, %s602_s28 }
  0x46   : > { %s187_s29 = scalar_lea.vmem [#allocation2], %s601_s24  ;;  %p1107_p11 = pnand %p719_p7, %p37_p9 }
  0x47   : > { %s194_s30 = sshll.u32 %s187_s29, 4  ;;  %s184_s6 = scalar_lea.sflag [#allocation3], %s183_s20  ;;  %s1105_s30 = int_to_ptr.vmem [resolvable:$true] %s194_s30 }
  0x48   : > { %s835_s25 = scalar_lea.hbm %s1103_s27, 128  ;;  %p837_p0 = pneg %p1107_p11 }
  0x49   : > { %p836_p12 = scmp.ne.s32.totalorder %s1103_s27, %s835_s25  ;;  %s840_s26 = scalar_lea.hbm %s1223_s0, 256 }
  0x4a   : > { %p841_p13 = scmp.lt.u32.totalorder %s1103_s27, %s1223_s0  ;;  %p842_p6 = scmp.lt.u32.totalorder %s840_s26, %s835_s25 }
  0x4b   : > { %p838_p2 = pnand %p837_p0, %p836_p12  ;;  %p844_p3 = scmp.lt.u32.totalorder %s835_s25, %s1103_s27 }
  0x4c   : > { %p843_p10 = por %p842_p6, %p841_p13 }
  0x4d   : > { %p839_p1 = pneg %p838_p2 }
  0x4e   : > { %p845_p7 = por %p844_p3, %p843_p10 }
  0x50   : > { %p846_p9 = pnand %p845_p7, %p839_p1 }
  0x52   : > { %849 = shalt.err (!%p846_p9)
}
  0x53   : > { %s850_s20 = scalar_lea.vmem %s1105_s30, 128  ;;  %s941_s28 = smov [#allocation2]  }
  0x54   : > { %p851_p12 = scmp.ne.s32.totalorder %s1105_s30, %s850_s20  ;;  %s855_s11 = sshll.u32 %s941_s28, 4  ;;  %s856_s11 = int_to_ptr.vmem [resolvable:$false] %s855_s11 }
  0x55   : > { %s857_s12 = scalar_lea.vmem %s856_s11, 256  ;;  %p858_p4 = scmp.lt.s32.totalorder %s1105_s30, %s856_s11 }
  0x56   : > { %p853_p2 = pnand %p851_p12, %p837_p0  ;;  %p859_p13 = scmp.lt.s32.totalorder %s857_s12, %s850_s20 }
  0x58   : > { %p854_p5 = pneg %p853_p2  ;;  %p860_p6 = por %p859_p13, %p858_p4 }
  0x5a   : > { %p861_p10 = pnand %p860_p6, %p854_p5 }
  0x5c   : > { %864 = shalt.err (!%p861_p10)
}
  0x5d   : > { %712 = dma.hbm_to_vmem [thread:$0]  (!%p1107_p11), %s1103_s27, 128, %s1105_s30, %s184_s6  }
  0x5e   : > { %203 = sbr.rel (%p1010_p8) target bundleno = 758 (0x2f6), region = 36  ;;  %s1139_s29 = sand.u32 (!%p1010_p8), 1, %s927_s16  }
  0x5f   : > { %s604_s25 = sshll.u32 (!%p1010_p8), %s1139_s29, 3  ;;  %s206_s7 = scalar_lea.sflag (!%p1010_p8), [#allocation3], %s1139_s29 }
  0x60   : > { %s1145_s8 = scalar_lea.vmem (!%p1010_p8), [#allocation2], %s604_s25  ;;  %p1238_p4 = scmp.ne.s32.totalorder (!%p1010_p8), %s1231_s21, 0 }
  0x65   : > { %910 = dma.done.wait (%p1238_p4), %s206_s7, 128  }
  0x66   : > { %912 = vsyncadd (%p1238_p4), %s206_s7, 4294967168  ;;  %p1239_p5 = scmp.eq.s32.totalorder %s991_s19, 0 }
  0x68   : > { %914 = dma.done.wait (%p1239_p5), [#allocation6], 2048   ;;  %p1240_p8 = pmov %p1239_p5 }
  0x69   : > { %v942_v0 = vmov 0.0   ;;  %vm943_vm0 = vmmov 0   ;;  %v761_v1 = vld [vmem:[#allocation5] sm:$0xff]   ;;  %v762_v2 = vld [vmem:[#allocation5 + $0x8] sm:$0xff]   ;;  %v763_v3 = vld [vmem:[#allocation5 + $0x10] sm:$0xff]   ;;  %s629_s24 = sshll.u32 %s991_s19, 7 }
  0x6a   : > { %916 = vsyncadd (%p1240_p8), [#allocation6], 4294965248  ;;  %650 = vmatprep.subr.bf16.mxu0 %v942_v0  ;;  %666 = vmatprep.mubr.msk.bf16.mxu0 %vm943_vm0, %v942_v0  ;;  %v764_v4 = vld [vmem:[#allocation5 + $0x18] sm:$0xff]   ;;  %v765_v5 = vld [vmem:[#allocation5 + $0x20] sm:$0xff]   ;;  %s241_s20 = scalar_lea.vmem [#allocation8], %s604_s25  ;;  %s1179_s7 = scalar_lea.hbm %s1227_s4, %s629_s24 }
  0x6b   : > { %670 = vmatprep.subr.bf16.mxu1 %v942_v0  ;;  %686 = vmatprep.mubr.msk.bf16.mxu1 %vm943_vm0, %v942_v0  ;;  %v766_v6 = vld [vmem:[#allocation5 + $0x28] sm:$0xff]   ;;  %v767_v7 = vld [vmem:[#allocation5 + $0x30] sm:$0xff]   ;;  %v768_v8 = vld [vmem:[#allocation5 + $0x38] sm:$0xff]   ;;  %s507_s28 = sshll.u32 %s241_s20, 4  ;;  %s494_s19 = scalar_lea.sflag [#allocation4], %s1139_s29  ;;  %s1181_s28 = int_to_ptr.vmem [resolvable:$true] %s507_s28 }
  0x6c   : > { %651 = vmatpush3.bf16.msra.mxu0 %v761_v1  ;;  %v1156_v9 = vld [vmem:[%s1145_s8] sm:$0xff]  ;;  %v769_v18 = vld [vmem:[#allocation7] sm:$0xff]   ;;  %v770_v19 = vld [vmem:[#allocation7 + $0x8] sm:$0xff]   ;;  %s865_s25 = scalar_lea.vmem %s1181_s28, 128  ;;  %p1241_p0 = scmp.ne.s32.totalorder %s1236_s13, 0 }
  0x6d   : > { %652 = vmatprep.subr.bf16.mxu0 %v942_v0  ;;  %v248_v10 = vpack.c.bf16 %v1156_v9, %v1156_v9  ;;  %v608_v11 = vld [vmem:[%s1226_s3] ss:$0 sm:$0xff]  ;;  %671 = vmatpush3.bf16.msra.mxu1 %v769_v18  ;;  %v772_v21 = vld [vmem:[#allocation7 + $0x18] sm:$0xff]   ;;  %v773_v22 = vld [vmem:[#allocation7 + $0x20] sm:$0xff]   ;;  %p866_p11 = scmp.ne.s32.totalorder %s1181_s28, %s865_s25  ;;  %s944_s8 = smov [#allocation8]  }
  0x6e   : > { %672 = vmatprep.subr.bf16.mxu1 %v942_v0  ;;  %v771_v20 = vld [vmem:[#allocation7 + $0x10] sm:$0xff]   ;;  %v774_v23 = vld [vmem:[#allocation7 + $0x28] sm:$0xff]   ;;  %v776_v25 = vld [vmem:[#allocation7 + $0x38] sm:$0xff]   ;;  %s869_s21 = sshll.u32 %s944_s8, 4  ;;  %s870_s21 = int_to_ptr.vmem [resolvable:$false] %s869_s21 }
  0x6f   : > { %v775_v24 = vld [vmem:[#allocation7 + $0x30] sm:$0xff]   ;;  %p867_p1 = pnand %p866_p11, %p1241_p0  ;;  %s871_s23 = scalar_lea.vmem %s870_s21, 256 }
  0x70   : > { %653 = vmatpush3.bf16.msra.mxu0 %v762_v2  ;;  %v617_v36 = vld [vmem:[%s1226_s3 + $0x1] ss:$0 sm:$0xff]  ;;  %v618_v38 = vld [vmem:[%s1226_s3 + $0x2] ss:$0 sm:$0xff]  ;;  %v619_v43 = vld [vmem:[%s1226_s3 + $0x3] ss:$0 sm:$0xff]  ;;  %p872_p7 = scmp.lt.s32.totalorder %s1181_s28, %s870_s21  ;;  %p873_p9 = scmp.lt.s32.totalorder %s871_s23, %s865_s25 }
  0x71   : > { %654 = vmatprep.subr.bf16.mxu0 %v942_v0  ;;  %673 = vmatpush3.bf16.msra.mxu1 %v770_v19  ;;  %p868_p3 = pneg %p867_p1 }
  0x72   : > { %674 = vmatprep.subr.bf16.mxu1 %v942_v0  ;;  %p874_p12 = por %p873_p9, %p872_p7 }
  0x74   : > { %655 = vmatpush3.bf16.msra.mxu0 %v763_v3  ;;  %p875_p2 = pnand %p874_p12, %p868_p3 }
  0x75   : > { %656 = vmatprep.subr.bf16.mxu0 %v942_v0  ;;  %675 = vmatpush3.bf16.msra.mxu1 %v771_v20 }
  0x76   : > { %676 = vmatprep.subr.bf16.mxu1 %v942_v0 }
  0x78   : > { %657 = vmatpush3.bf16.msra.mxu0 %v764_v4 }
  0x79   : > { %658 = vmatprep.subr.bf16.mxu0 %v942_v0  ;;  %677 = vmatpush3.bf16.msra.mxu1 %v772_v21 }
  0x7a   : > { %678 = vmatprep.subr.bf16.mxu1 %v942_v0 }
  0x7c   : > { %659 = vmatpush3.bf16.msra.mxu0 %v765_v5 }
  0x7d   : > { %660 = vmatprep.subr.bf16.mxu0 %v942_v0  ;;  %679 = vmatpush3.bf16.msra.mxu1 %v773_v22 }
  0x7e   : > { %680 = vmatprep.subr.bf16.mxu1 %v942_v0 }
  0x80   : > { %661 = vmatpush3.bf16.msra.mxu0 %v766_v6 }
  0x81   : > { %662 = vmatprep.subr.bf16.mxu0 %v942_v0  ;;  %681 = vmatpush3.bf16.msra.mxu1 %v774_v23 }
  0x82   : > { %682 = vmatprep.subr.bf16.mxu1 %v942_v0 }
  0x84   : > { %663 = vmatpush3.bf16.msra.mxu0 %v767_v7 }
  0x85   : > { %664 = vmatprep.subr.bf16.mxu0 %v942_v0  ;;  %683 = vmatpush3.bf16.msra.mxu1 %v775_v24 }
  0x86   : > { %684 = vmatprep.subr.bf16.mxu1 %v942_v0 }
  0x88   : > { %665 = vmatpush3.bf16.msra.mxu0 %v768_v8 }
  0x89   : > { %685 = vmatpush3.bf16.msra.mxu1 %v776_v25 }
  0x8b   : > { %667 = vmatmul.mubr.bf16.vlgmr.msra.gmra.mrb[0].mxu0 %v248_v10 }
 0x15e   : > { %v351_v12 = vpop.f32.mrb[0].mxu0 }
 0x15f   : > { %v352_v13 = vadd.f32 %v608_v11, %v351_v12  ;;  %v668_v14 = vpop.f32.mrb[1].mxu0 }
 0x160   : > { %v354_v15 = vpop.f32.mrb[2].mxu0 }
 0x161   : > { %v669_v16 = vpop.f32.mrb[3].mxu0  ;;  %357 = vadd.xlane.f32.xlu0 %v352_v13  ;;  %v360_v17 = vmul.f32 %v352_v13, %v352_v13 }
 0x165   : > { %361 = vadd.xlane.f32.xlu0 %v360_v17 }
 0x1ee   : > { %v358_v26 = vpop.xlane.xlu0 %357 }
 0x1ef   : > { %v359_v27 = vmul.f32 0.03125, %v358_v26 }
 0x1f1   : > { %v364_v29 = vmul.f32 %v359_v27, %v359_v27  ;;  %v367_v34 = vsub.f32 %v352_v13, %v359_v27 }
 0x1f2   : > { %v362_v28 = vpop.xlane.xlu0 %361 }
 0x1f3   : > { %v363_v30 = vmul.f32 0.03125, %v362_v28 }
 0x1f5   : > { %v365_v31 = vsub.f32 %v363_v30, %v364_v29 }
 0x1f7   : > { %v366_v32 = vmax.f32 %v365_v31, 0.0 }
 0x1f9   : > { %v368_v33 = vadd.f32 1e-05, %v366_v32 }
 0x1fb   : > { %777 = vrsqrt.f32 %v368_v33 }
 0x205   : > { %v778_v35 = vpop.eup %777 }
 0x206   : > { %v370_v37 = vmul.f32 %v778_v35, %v367_v34 }
 0x208   : > { %v375_v39 = vmul.f32 %v617_v36, %v370_v37 }
 0x20a   : > { %v380_v40 = vadd.f32 %v618_v38, %v375_v39 }
 0x20c   : > { %v381_v41 = vmax.f32 %v380_v40, 0.0 }
 0x20e   : > { %v382_v42 = vpack.c.bf16 %v381_v41, %v381_v41 }
 0x210   : > { %687 = vmatmul.mubr.bf16.vlgmr.msra.gmra.mrb[0].mxu1 %v382_v42 }
 0x2e3   : > { %v485_v44 = vpop.f32.mrb[0].mxu1 }
 0x2e4   : > { %v486_v45 = vadd.f32 %v619_v43, %v485_v44  ;;  %v688_v46 = vpop.f32.mrb[1].mxu1 }
 0x2e5   : > { %v488_v47 = vpop.f32.mrb[2].mxu1 }
 0x2e6   : > { %v491_v48 = vadd.f32 %v486_v45, %v1156_v9  ;;  %v689_v49 = vpop.f32.mrb[3].mxu1 }
 0x2e8   : > { %492 = vst [vmem:[%s241_s20] sm:$0xff] %v491_v48 }
 0x2e9   : > { %878 = shalt.err (!%p875_p2)
}
 0x2ea   : > { %s879_s29 = scalar_lea.hbm %s1179_s7, 128  ;;  %s883_s5 = scalar_lea.hbm %s1227_s4, 256 }
 0x2eb   : > { %p880_p13 = scmp.ne.s32.totalorder %s1179_s7, %s879_s29  ;;  %p884_p4 = scmp.lt.u32.totalorder %s1179_s7, %s1227_s4 }
 0x2ec   : > { %p885_p5 = scmp.lt.u32.totalorder %s883_s5, %s879_s29  ;;  %p887_p11 = scmp.lt.u32.totalorder %s879_s29, %s1179_s7 }
 0x2ed   : > { %p881_p6 = pnand %p880_p13, %p1241_p0 }
 0x2ee   : > { %p886_p8 = por %p885_p5, %p884_p4 }
 0x2ef   : > { %p882_p10 = pneg %p881_p6 }
 0x2f0   : > { %p888_p1 = por %p887_p11, %p886_p8 }
 0x2f2   : > { %p889_p3 = pnand %p888_p1, %p882_p10 }
 0x2f4   : > { %892 = shalt.err (!%p889_p3)
}
 0x2f5   : > { %700 = dma.vmem_to_hbm [thread:$0]  (%p1241_p0), %s1181_s28, 128, %s1179_s7, %s494_s19  }
 0x2f6 PF: > { %s519_s10 = sand.u32 1, %s923_s15   ;;  %p1242_p7 = scmp.ne.s32.totalorder %s1232_s22, 0 }
 0x2f7   : > { %p1243_p9 = scmp.ge.s32.totalorder %s935_s18, 2  ;;  %s520_s24 = scalar_lea.sflag [#allocation4], %s519_s10 }
 0x2f9   : > { %p714_p12 = pnand %p1243_p9, %p1242_p7 }
 0x2fb   : > { %918 = dma.done.wait (!%p714_p12), %s520_s24, 128  }
 0x2fc   : > { %920 = vsyncadd (!%p714_p12), %s520_s24, 4294967168  ;;  %p18_p2 = scmp.ge.s32.totalorder %s1080_s9, 4   ;;  %s1244_s15 = smov %s927_s16 }
 0x2fd   : > { %s1245_s16 = smov %s931_s17  ;;  %s1246_s17 = smov %s1096_s14 }
 0x2fe   : > { %s1247_s18 = smov %s1080_s9  ;;  %20 = sbr.rel (!%p18_p2) target bundleno = 6 (0x6), region = 89 }
 0x305   :  { %525 = vsyncpa [#allocation3], 1 }
 0x306   :  { %527 = vsyncpa [#allocation3 + $0x1], 1 }
 0x307   :  { %528 = vsyncpa [#allocation6], 1 }
 0x308   :  { %529 = vsyncpa [#allocation4], 1 }
 0x309   :  { %531 = vsyncpa [#allocation4 + $0x1], 1 }

// kernel: tpu_custom_call.1
= control target key start
LH: loop header
LB: loop body
LE: loop exit
PB: predicated region body
PF: predicated region fallthrough
CT: control target
= control target key end

     0   :  { %9 = vsyncpa [#allocation3], 0  ;;  %s1223_s0 = inlined_call_operand.hbm [shape: f32[16,128], index: 0, kind: input, shape index: {}]   ;;  %s1224_s1 = inlined_call_operand.hbm [shape: bf16[128,128], index: 1, kind: input, shape index: {}]   ;;  %s1225_s2 = inlined_call_operand.hbm [shape: bf16[128,128], index: 2, kind: input, shape index: {}]   ;;  %s1226_s3 = inlined_call_operand.vmem [shape: f32[4,128], index: 3, kind: input, shape index: {}]   ;;  %s1227_s4 = inlined_call_operand.hbm [shape: f32[16,128], index: 4, kind: output, shape index: {}]  }
   0x1   :  { %11 = vsyncpa [#allocation3 + $0x1], 0 }
   0x2   :  { %12 = vsyncpa [#allocation6], 0 }
   0x3   :  { %13 = vsyncpa [#allocation4], 0 }
   0x4   :  { %15 = vsyncpa [#allocation4 + $0x1], 0  ;;  %s970_s15 = smov 0   ;;  %s972_s16 = smov 0  }
   0x5   :  { %s974_s17 = smov 0   ;;  %s976_s18 = smov 0  }
   0x6 LB: > { %s991_s19 = sadd.s32 4294967295, %s935_s18   ;;  %s596_s20 = sadd.s32 4294967294, %s935_s18   ;;  %s935_s18 = sphi %s976_s18, %s1247_s18   ;;  %s931_s17 = sphi %s974_s17, %s1246_s17   ;;  %s927_s16 = sphi %s972_s16, %s1245_s16   ;;  %s923_s15 = sphi %s970_s15, %s1244_s15  }
   0x7   : > { %p41_p0 = scmp.ne.s32.totalorder %s927_s16, %s923_s15  ;;  %p1228_p1 = scmp.eq.s32.totalorder %s991_s19, 0 }
   0x8   : > { %p134_p3 = scmp.eq.s32.totalorder %s596_s20, 1  ;;  %p597_p5 = scmp.ge.s32.totalorder %s935_s18, 1 }
   0x9   : > { %p1000_p4 = por %p1228_p1, %p41_p0  ;;  %p141_p7 = scmp.lt.s32.totalorder %s935_s18, 3 }
   0xa   : > { %p1005_p6 = por %p134_p3, %p41_p0  ;;  %s937_s24 = smov [#allocation5]  }
   0xb   : > { %s1231_s21 = scalar_select %p1000_p4, 1, 0 }
   0xc   : > { %s1232_s22 = scalar_select %p1005_p6, 1, 0 }
   0xd   : > { %p1010_p8 = pnand %p597_p5, %p141_p7  ;;  %s153_s25 = sshll.u32 %s937_s24, 4  ;;  %s1014_s25 = int_to_ptr.vmem [resolvable:$true] %s153_s25 }
   0xe   : > { %s938_s27 = smov [#allocation7]   ;;  %s779_s5 = scalar_lea.hbm %s1224_s1, 1024 }
   0xf   : > { %p702_p9 = pneg %p1010_p8  ;;  %s166_s28 = sshll.u32 %s938_s27, 4  ;;  %s1025_s28 = int_to_ptr.vmem [resolvable:$true] %s166_s28 }
  0x10   : > { %p780_p12 = scmp.ne.s32.totalorder %s1224_s1, %s779_s5  ;;  %p786_p5 = scmp.lt.u32.totalorder %s779_s5, %s1224_s1 }
  0x11   : > { %p1021_p11 = pnand %p702_p9, %p1228_p1 }
  0x13   : > { %p781_p13 = pneg %p1021_p11 }
  0x15   : > { %p782_p0 = pnand %p781_p13, %p780_p12 }
  0x17   : > { %p783_p3 = pneg %p782_p0 }
  0x19   : > { %p788_p7 = pnand %p786_p5, %p783_p3 }
  0x1b   : > { %791 = shalt.err (!%p788_p7)
}
  0x1c   : > { %s792_s10 = scalar_lea.vmem %s1014_s25, 1024  ;;  %p800_p2 = scmp.lt.s32.totalorder %s1014_s25, %s1014_s25 }
  0x1d   : > { %p793_p9 = scmp.ne.s32.totalorder %s1014_s25, %s792_s10  ;;  %p801_p12 = scmp.lt.s32.totalorder %s792_s10, %s792_s10 }
  0x1f   : > { %p795_p10 = pnand %p793_p9, %p781_p13  ;;  %p802_p0 = por %p801_p12, %p800_p2 }
  0x21   : > { %p796_p1 = pneg %p795_p10 }
  0x23   : > { %p803_p6 = pnand %p802_p0, %p796_p1 }
  0x25   : > { %806 = shalt.err (!%p803_p6)
}
  0x26   : > { %s939_s11 = smov 64   ;;  %s940_s12 = smov 4  }
  0x27   : > { %705 = dma.hbm_to_vmem [thread:$0]  (!%p1021_p11), %s1224_s1, 1024, %s1014_s25, [#allocation6], %s939_s11, %s939_s11, %s940_s12  }
  0x28   : > { %s807_s27 = scalar_lea.hbm %s1225_s2, 1024 }
  0x29   : > { %p808_p2 = scmp.ne.s32.totalorder %s1225_s2, %s807_s27  ;;  %p814_p10 = scmp.lt.u32.totalorder %s807_s27, %s1225_s2 }
  0x2b   : > { %p810_p1 = pnand %p808_p2, %p781_p13 }
  0x2d   : > { %p811_p6 = pneg %p810_p1 }
  0x2f   : > { %p816_p3 = pnand %p814_p10, %p811_p6 }
  0x31   : > { %819 = shalt.err (!%p816_p3)
}
  0x32   : > { %s820_s25 = scalar_lea.vmem %s1025_s28, 1024  ;;  %p828_p12 = scmp.lt.s32.totalorder %s1025_s28, %s1025_s28 }
  0x33   : > { %p821_p5 = scmp.ne.s32.totalorder %s1025_s28, %s820_s25  ;;  %p829_p0 = scmp.lt.s32.totalorder %s820_s25, %s820_s25 }
  0x35   : > { %p823_p7 = pnand %p821_p5, %p781_p13  ;;  %p830_p2 = por %p829_p0, %p828_p12 }
  0x37   : > { %p824_p9 = pneg %p823_p7 }
  0x39   : > { %p831_p1 = pnand %p830_p2, %p824_p9 }
  0x3b   : > { %834 = shalt.err (!%p831_p1)
}
  0x3c   : > { %708 = dma.hbm_to_vmem [thread:$0]  (!%p1021_p11), %s1225_s2, 1024, %s1025_s28, [#allocation6], %s939_s11, %s939_s11, %s940_s12  }
  0x3d   : > { %s1080_s9 = sadd.s32 1, %s935_s18   ;;  %s28_s26 = sadd.s32 1, %s931_s17 }
  0x3e   : > { %s25_s10 = ssub.s32 %s935_s18, %s1080_s9  ;;  %p35_p13 = scmp.ne.s32.totalorder %s931_s17, %s927_s16 }
  0x3f   : > { %p26_p6 = scmp.eq.s32.totalorder %s25_s10, 0  ;;  %p36_p10 = scmp.eq.s32.totalorder %s935_s18, 0 }
  0x40   : > { %p1235_p3 = scmp.eq.s32.totalorder %s991_s19, 1  ;;  %p719_p7 = scmp.lt.s32.totalorder %s935_s18, 2 }
  0x41   : > { %s1096_s14 = scalar_select %p26_p6, %s931_s17, %s28_s26  }
  0x42   : > { %p1090_p5 = por %p1235_p3, %p35_p13  ;;  %p37_p9 = por %p36_p10, %p35_p13 }
  0x43   : > { %s183_s20 = sand.u32 1, %s931_s17   ;;  %s602_s28 = sshll.u32 %s935_s18, 7 }
  0x44   : > { %s1236_s13 = scalar_select %p1090_p5, 1, 0 }
  0x45   : > { %s601_s24 = sshll.u32 %s183_s20, 3  ;;  %s1103_s27 = scalar_lea.hbm %s1223_s0, %s602_s28 }
  0x46   : > { %s187_s29 = scalar_lea.vmem [#allocation2], %s601_s24  ;;  %p1107_p11 = pnand %p719_p7, %p37_p9 }
  0x47   : > { %s194_s30 = sshll.u32 %s187_s29, 4  ;;  %s184_s6 = scalar_lea.sflag [#allocation3], %s183_s20  ;;  %s1105_s30 = int_to_ptr.vmem [resolvable:$true] %s194_s30 }
  0x48   : > { %s835_s25 = scalar_lea.hbm %s1103_s27, 128  ;;  %p837_p0 = pneg %p1107_p11 }
  0x49   : > { %p836_p12 = scmp.ne.s32.totalorder %s1103_s27, %s835_s25  ;;  %s840_s26 = scalar_lea.hbm %s1223_s0, 256 }
  0x4a   : > { %p841_p13 = scmp.lt.u32.totalorder %s1103_s27, %s1223_s0  ;;  %p842_p6 = scmp.lt.u32.totalorder %s840_s26, %s835_s25 }
  0x4b   : > { %p838_p2 = pnand %p837_p0, %p836_p12  ;;  %p844_p3 = scmp.lt.u32.totalorder %s835_s25, %s1103_s27 }
  0x4c   : > { %p843_p10 = por %p842_p6, %p841_p13 }
  0x4d   : > { %p839_p1 = pneg %p838_p2 }
  0x4e   : > { %p845_p7 = por %p844_p3, %p843_p10 }
  0x50   : > { %p846_p9 = pnand %p845_p7, %p839_p1 }
  0x52   : > { %849 = shalt.err (!%p846_p9)
}
  0x53   : > { %s850_s20 = scalar_lea.vmem %s1105_s30, 128  ;;  %s941_s28 = smov [#allocation2]  }
  0x54   : > { %p851_p12 = scmp.ne.s32.totalorder %s1105_s30, %s850_s20  ;;  %s855_s11 = sshll.u32 %s941_s28, 4  ;;  %s856_s11 = int_to_ptr.vmem [resolvable:$false] %s855_s11 }
  0x55   : > { %s857_s12 = scalar_lea.vmem %s856_s11, 256  ;;  %p858_p4 = scmp.lt.s32.totalorder %s1105_s30, %s856_s11 }
  0x56   : > { %p853_p2 = pnand %p851_p12, %p837_p0  ;;  %p859_p13 = scmp.lt.s32.totalorder %s857_s12, %s850_s20 }
  0x58   : > { %p854_p5 = pneg %p853_p2  ;;  %p860_p6 = por %p859_p13, %p858_p4 }
  0x5a   : > { %p861_p10 = pnand %p860_p6, %p854_p5 }
  0x5c   : > { %864 = shalt.err (!%p861_p10)
}
  0x5d   : > { %712 = dma.hbm_to_vmem [thread:$0]  (!%p1107_p11), %s1103_s27, 128, %s1105_s30, %s184_s6  }
  0x5e   : > { %203 = sbr.rel (%p1010_p8) target bundleno = 758 (0x2f6), region = 36  ;;  %s1139_s29 = sand.u32 (!%p1010_p8), 1, %s927_s16  }
  0x5f   : > { %s604_s25 = sshll.u32 (!%p1010_p8), %s1139_s29, 3  ;;  %s206_s7 = scalar_lea.sflag (!%p1010_p8), [#allocation3], %s1139_s29 }
  0x60   : > { %s1145_s8 = scalar_lea.vmem (!%p1010_p8), [#allocation2], %s604_s25  ;;  %p1238_p4 = scmp.ne.s32.totalorder (!%p1010_p8), %s1231_s21, 0 }
  0x65   : > { %910 = dma.done.wait (%p1238_p4), %s206_s7, 128  }
  0x66   : > { %912 = vsyncadd (%p1238_p4), %s206_s7, 4294967168  ;;  %p1239_p5 = scmp.eq.s32.totalorder %s991_s19, 0 }
  0x68   : > { %914 = dma.done.wait (%p1239_p5), [#allocation6], 2048   ;;  %p1240_p8 = pmov %p1239_p5 }
  0x69   : > { %v942_v0 = vmov 0.0   ;;  %vm943_vm0 = vmmov 0   ;;  %v761_v1 = vld [vmem:[#allocation5] sm:$0xff]   ;;  %v762_v2 = vld [vmem:[#allocation5 + $0x8] sm:$0xff]   ;;  %v763_v3 = vld [vmem:[#allocation5 + $0x10] sm:$0xff]   ;;  %s629_s24 = sshll.u32 %s991_s19, 7 }
  0x6a   : > { %916 = vsyncadd (%p1240_p8), [#allocation6], 4294965248  ;;  %650 = vmatprep.subr.bf16.mxu0 %v942_v0  ;;  %666 = vmatprep.mubr.msk.bf16.mxu0 %vm943_vm0, %v942_v0  ;;  %v764_v4 = vld [vmem:[#allocation5 + $0x18] sm:$0xff]   ;;  %v765_v5 = vld [vmem:[#allocation5 + $0x20] sm:$0xff]   ;;  %s241_s20 = scalar_lea.vmem [#allocation8], %s604_s25  ;;  %s1179_s7 = scalar_lea.hbm %s1227_s4, %s629_s24 }
  0x6b   : > { %670 = vmatprep.subr.bf16.mxu1 %v942_v0  ;;  %686 = vmatprep.mubr.msk.bf16.mxu1 %vm943_vm0, %v942_v0  ;;  %v766_v6 = vld [vmem:[#allocation5 + $0x28] sm:$0xff]   ;;  %v767_v7 = vld [vmem:[#allocation5 + $0x30] sm:$0xff]   ;;  %v768_v8 = vld [vmem:[#allocation5 + $0x38] sm:$0xff]   ;;  %s507_s28 = sshll.u32 %s241_s20, 4  ;;  %s494_s19 = scalar_lea.sflag [#allocation4], %s1139_s29  ;;  %s1181_s28 = int_to_ptr.vmem [resolvable:$true] %s507_s28 }
  0x6c   : > { %651 = vmatpush3.bf16.msra.mxu0 %v761_v1  ;;  %v1156_v9 = vld [vmem:[%s1145_s8] sm:$0xff]  ;;  %v769_v18 = vld [vmem:[#allocation7] sm:$0xff]   ;;  %v770_v19 = vld [vmem:[#allocation7 + $0x8] sm:$0xff]   ;;  %s865_s25 = scalar_lea.vmem %s1181_s28, 128  ;;  %p1241_p0 = scmp.ne.s32.totalorder %s1236_s13, 0 }
  0x6d   : > { %652 = vmatprep.subr.bf16.mxu0 %v942_v0  ;;  %v248_v10 = vpack.c.bf16 %v1156_v9, %v1156_v9  ;;  %v608_v11 = vld [vmem:[%s1226_s3] ss:$0 sm:$0xff]  ;;  %671 = vmatpush3.bf16.msra.mxu1 %v769_v18  ;;  %v772_v21 = vld [vmem:[#allocation7 + $0x18] sm:$0xff]   ;;  %v773_v22 = vld [vmem:[#allocation7 + $0x20] sm:$0xff]   ;;  %p866_p11 = scmp.ne.s32.totalorder %s1181_s28, %s865_s25  ;;  %s944_s8 = smov [#allocation8]  }
  0x6e   : > { %672 = vmatprep.subr.bf16.mxu1 %v942_v0  ;;  %v771_v20 = vld [vmem:[#allocation7 + $0x10] sm:$0xff]   ;;  %v774_v23 = vld [vmem:[#allocation7 + $0x28] sm:$0xff]   ;;  %v776_v25 = vld [vmem:[#allocation7 + $0x38] sm:$0xff]   ;;  %s869_s21 = sshll.u32 %s944_s8, 4  ;;  %s870_s21 = int_to_ptr.vmem [resolvable:$false] %s869_s21 }
  0x6f   : > { %v775_v24 = vld [vmem:[#allocation7 + $0x30] sm:$0xff]   ;;  %p867_p1 = pnand %p866_p11, %p1241_p0  ;;  %s871_s23 = scalar_lea.vmem %s870_s21, 256 }
  0x70   : > { %653 = vmatpush3.bf16.msra.mxu0 %v762_v2  ;;  %v617_v36 = vld [vmem:[%s1226_s3 + $0x1] ss:$0 sm:$0xff]  ;;  %v618_v38 = vld [vmem:[%s1226_s3 + $0x2] ss:$0 sm:$0xff]  ;;  %v619_v43 = vld [vmem:[%s1226_s3 + $0x3] ss:$0 sm:$0xff]  ;;  %p872_p7 = scmp.lt.s32.totalorder %s1181_s28, %s870_s21  ;;  %p873_p9 = scmp.lt.s32.totalorder %s871_s23, %s865_s25 }
  0x71   : > { %654 = vmatprep.subr.bf16.mxu0 %v942_v0  ;;  %673 = vmatpush3.bf16.msra.mxu1 %v770_v19  ;;  %p868_p3 = pneg %p867_p1 }
  0x72   : > { %674 = vmatprep.subr.bf16.mxu1 %v942_v0  ;;  %p874_p12 = por %p873_p9, %p872_p7 }
  0x74   : > { %655 = vmatpush3.bf16.msra.mxu0 %v763_v3  ;;  %p875_p2 = pnand %p874_p12, %p868_p3 }
  0x75   : > { %656 = vmatprep.subr.bf16.mxu0 %v942_v0  ;;  %675 = vmatpush3.bf16.msra.mxu1 %v771_v20 }
  0x76   : > { %676 = vmatprep.subr.bf16.mxu1 %v942_v0 }
  0x78   : > { %657 = vmatpush3.bf16.msra.mxu0 %v764_v4 }
  0x79   : > { %658 = vmatprep.subr.bf16.mxu0 %v942_v0  ;;  %677 = vmatpush3.bf16.msra.mxu1 %v772_v21 }
  0x7a   : > { %678 = vmatprep.subr.bf16.mxu1 %v942_v0 }
  0x7c   : > { %659 = vmatpush3.bf16.msra.mxu0 %v765_v5 }
  0x7d   : > { %660 = vmatprep.subr.bf16.mxu0 %v942_v0  ;;  %679 = vmatpush3.bf16.msra.mxu1 %v773_v22 }
  0x7e   : > { %680 = vmatprep.subr.bf16.mxu1 %v942_v0 }
  0x80   : > { %661 = vmatpush3.bf16.msra.mxu0 %v766_v6 }
  0x81   : > { %662 = vmatprep.subr.bf16.mxu0 %v942_v0  ;;  %681 = vmatpush3.bf16.msra.mxu1 %v774_v23 }
  0x82   : > { %682 = vmatprep.subr.bf16.mxu1 %v942_v0 }
  0x84   : > { %663 = vmatpush3.bf16.msra.mxu0 %v767_v7 }
  0x85   : > { %664 = vmatprep.subr.bf16.mxu0 %v942_v0  ;;  %683 = vmatpush3.bf16.msra.mxu1 %v775_v24 }
  0x86   : > { %684 = vmatprep.subr.bf16.mxu1 %v942_v0 }
  0x88   : > { %665 = vmatpush3.bf16.msra.mxu0 %v768_v8 }
  0x89   : > { %685 = vmatpush3.bf16.msra.mxu1 %v776_v25 }
  0x8b   : > { %667 = vmatmul.mubr.bf16.vlgmr.msra.gmra.mrb[0].mxu0 %v248_v10 }
 0x15e   : > { %v351_v12 = vpop.f32.mrb[0].mxu0 }
 0x15f   : > { %v352_v13 = vadd.f32 %v608_v11, %v351_v12  ;;  %v668_v14 = vpop.f32.mrb[1].mxu0 }
 0x160   : > { %v354_v15 = vpop.f32.mrb[2].mxu0 }
 0x161   : > { %v669_v16 = vpop.f32.mrb[3].mxu0  ;;  %357 = vadd.xlane.f32.xlu0 %v352_v13  ;;  %v360_v17 = vmul.f32 %v352_v13, %v352_v13 }
 0x165   : > { %361 = vadd.xlane.f32.xlu0 %v360_v17 }
 0x1ee   : > { %v358_v26 = vpop.xlane.xlu0 %357 }
 0x1ef   : > { %v359_v27 = vmul.f32 0.03125, %v358_v26 }
 0x1f1   : > { %v364_v29 = vmul.f32 %v359_v27, %v359_v27  ;;  %v367_v34 = vsub.f32 %v352_v13, %v359_v27 }
 0x1f2   : > { %v362_v28 = vpop.xlane.xlu0 %361 }
 0x1f3   : > { %v363_v30 = vmul.f32 0.03125, %v362_v28 }
 0x1f5   : > { %v365_v31 = vsub.f32 %v363_v30, %v364_v29 }
 0x1f7   : > { %v366_v32 = vmax.f32 %v365_v31, 0.0 }
 0x1f9   : > { %v368_v33 = vadd.f32 1e-05, %v366_v32 }
 0x1fb   : > { %777 = vrsqrt.f32 %v368_v33 }
 0x205   : > { %v778_v35 = vpop.eup %777 }
 0x206   : > { %v370_v37 = vmul.f32 %v778_v35, %v367_v34 }
 0x208   : > { %v375_v39 = vmul.f32 %v617_v36, %v370_v37 }
 0x20a   : > { %v380_v40 = vadd.f32 %v618_v38, %v375_v39 }
 0x20c   : > { %v381_v41 = vmax.f32 %v380_v40, 0.0 }
 0x20e   : > { %v382_v42 = vpack.c.bf16 %v381_v41, %v381_v41 }
 0x210   : > { %687 = vmatmul.mubr.bf16.vlgmr.msra.gmra.mrb[0].mxu1 %v382_v42 }
 0x2e3   : > { %v485_v44 = vpop.f32.mrb[0].mxu1 }
 0x2e4   : > { %v486_v45 = vadd.f32 %v619_v43, %v485_v44  ;;  %v688_v46 = vpop.f32.mrb[1].mxu1 }
 0x2e5   : > { %v488_v47 = vpop.f32.mrb[2].mxu1 }
 0x2e6   : > { %v491_v48 = vadd.f32 %v486_v45, %v1156_v9  ;;  %v689_v49 = vpop.f32.mrb[3].mxu1 }
 0x2e8   : > { %492 = vst [vmem:[%s241_s20] sm:$0xff] %v491_v48 }
 0x2e9   : > { %878 = shalt.err (!%p875_p2)
}
 0x2ea   : > { %s879_s29 = scalar_lea.hbm %s1179_s7, 128  ;;  %s883_s5 = scalar_lea.hbm %s1227_s4, 256 }
 0x2eb   : > { %p880_p13 = scmp.ne.s32.totalorder %s1179_s7, %s879_s29  ;;  %p884_p4 = scmp.lt.u32.totalorder %s1179_s7, %s1227_s4 }
 0x2ec   : > { %p885_p5 = scmp.lt.u32.totalorder %s883_s5, %s879_s29  ;;  %p887_p11 = scmp.lt.u32.totalorder %s879_s29, %s1179_s7 }
 0x2ed   : > { %p881_p6 = pnand %p880_p13, %p1241_p0 }
 0x2ee   : > { %p886_p8 = por %p885_p5, %p884_p4 }
 0x2ef   : > { %p882_p10 = pneg %p881_p6 }
 0x2f0   : > { %p888_p1 = por %p887_p11, %p886_p8 }
 0x2f2   : > { %p889_p3 = pnand %p888_p1, %p882_p10 }
 0x2f4   : > { %892 = shalt.err (!%p889_p3)
}
 0x2f5   : > { %700 = dma.vmem_to_hbm [thread:$0]  (%p1241_p0), %s1181_s28, 128, %s1179_s7, %s494_s19  }
 0x2f6 PF: > { %s519_s10 = sand.u32 1, %s923_s15   ;;  %p1242_p7 = scmp.ne.s32.totalorder %s1232_s22, 0 }
 0x2f7   : > { %p1243_p9 = scmp.ge.s32.totalorder %s935_s18, 2  ;;  %s520_s24 = scalar_lea.sflag [#allocation4], %s519_s10 }
 0x2f9   : > { %p714_p12 = pnand %p1243_p9, %p1242_p7 }
 0x2fb   : > { %918 = dma.done.wait (!%p714_p12), %s520_s24, 128  }
 0x2fc   : > { %920 = vsyncadd (!%p714_p12), %s520_s24, 4294967168  ;;  %p18_p2 = scmp.ge.s32.totalorder %s1080_s9, 4   ;;  %s1244_s15 = smov %s927_s16 }
 0x2fd   : > { %s1245_s16 = smov %s931_s17  ;;  %s1246_s17 = smov %s1096_s14 }
 0x2fe   : > { %s1247_s18 = smov %s1080_s9  ;;  %20 = sbr.rel (!%p18_p2) target bundleno = 6 (0x6), region = 89 }
 0x305   :  { %525 = vsyncpa [#allocation3], 1 }
 0x306   :  { %527 = vsyncpa [#allocation3 + $0x1], 1 }
 0x307   :  { %528 = vsyncpa [#allocation6], 1 }
 0x308   :  { %529 = vsyncpa [#allocation4], 1 }
 0x309   :  { %531 = vsyncpa [#allocation4 + $0x1], 1 }

</bundles_post_ra>
